<compile_context>
chip_gen: v5e
topology: v5e:2x2
jax: 0.10.0
libtpu: 0.0.40
codegen_flags: <defaults>
</compile_context>

<pallas_src>
import functools

import jax
import jax.numpy as jnp
from jax.experimental import pallas as pl
from jax.experimental.pallas import tpu as pltpu


def _gradx_kernel(x_ref, o_ref, *, reverse, pad):
    # x_ref: VMEM (tile_rows, w)      unpadded input rows
    # o_ref: VMEM (tile_rows, w + 1)  if pad else (tile_rows, w - 1)
    x = x_ref[...]
    w = x.shape[1]
    if pad:
        # Edge-replicate padding done in registers:
        #   right[j] = x[min(j, w-1)], left[j] = x[max(j-1, 0)]  (width w+1)
        # => d[0] = 0, d[j] = x[j] - x[j-1] for 1<=j<=w-1, d[w] = 0.
        # Single subtract, single unmasked full-tile store.
        right = jnp.concatenate([x, x[:, w - 1:w]], axis=1)
        left = jnp.concatenate([x[:, 0:1], x], axis=1)
        d = right - left
    else:
        # Plain forward difference, width w-1 (already a single full store).
        d = x[:, 1:] - x[:, :-1]
    if reverse:
        d = -d
    o_ref[...] = d.astype(o_ref.dtype)


def _pick_tile_rows(rows, width, itemsize):
    """Row tile: ~4 MiB input block, dtype-aware sublane multiple, >=4 grid steps."""
    target_bytes = 4 * 1024 * 1024
    # Sublane packing: 8 for 32-bit, 16 for 16-bit, 32 for 8-bit dtypes.
    sublane = max(8, 32 // max(1, itemsize))
    if rows <= sublane:
        # Full-size block is allowed even when rows is not a packing multiple.
        return rows
    t = max(sublane, (target_bytes // max(1, width * itemsize)) // sublane * sublane)
    # Keep at least 4 grid steps (>= 2 per v7x TensorCore) so the input fetch
    # and output writeback pipeline across steps instead of serializing.
    quarter = -(-rows // 4)                                       # ceil(rows/4)
    quarter = max(sublane, ((quarter + sublane - 1) // sublane) * sublane)
    return min(t, quarter)


@functools.partial(jax.jit, static_argnames=("reverse", "pad"))
def gradient_x(x, *, reverse=False, pad=True):
    """Pallas implementation of GradientX.forward.

    x: [n, c, h, w] float array (NCHW, same as the PyTorch module).
    Returns: [n, c, h, w + 1] if pad else [n, c, h, w - 1].
    """
    n, c, h, w = x.shape
    dtype = x.dtype
    rows = n * c * h
    w_out = w + 1 if pad else w - 1

    if w_out <= 0:
        # Degenerate w == 1, pad=False: zero-width output; skip lowering.
        return jnp.zeros((n, c, h, max(w_out, 0)), dtype=dtype)

    x2d = x.reshape(rows, w)
    itemsize = jnp.dtype(dtype).itemsize
    tile_rows = _pick_tile_rows(rows, max(w, w_out), itemsize)
    grid = (pl.cdiv(rows, tile_rows),)

    kernel = functools.partial(_gradx_kernel, reverse=reverse, pad=pad)

    out2d = pl.pallas_call(
        kernel,
        out_shape=jax.ShapeDtypeStruct((rows, w_out), dtype),
        grid_spec=pltpu.PrefetchScalarGridSpec(
            num_scalar_prefetch=0,
            grid=grid,
            in_specs=[pl.BlockSpec((tile_rows, w), lambda i: (i, 0))],
            out_specs=pl.BlockSpec((tile_rows, w_out), lambda i: (i, 0)),
        ),
        compiler_params=pltpu.CompilerParams(
            dimension_semantics=("parallel",),
            vmem_limit_bytes=28 * 1024 * 1024,
        ),
    )(x2d)

    return out2d.reshape(n, c, h, w_out)


def _reference(x, *, reverse=False, pad=True):
    # Pure-JAX reference mirroring the PyTorch module.
    if pad:
        xp = jnp.pad(x, ((0, 0), (0, 0), (0, 0), (1, 1)), mode="edge")
    else:
        xp = x
    if reverse:
        return xp[..., :-1] - xp[..., 1:]
    return xp[..., 1:] - xp[..., :-1]


if __name__ == "__main__":
    key = jax.random.PRNGKey(0)
    n, c, h, w = 2, 4, 16, 16
    x = jax.random.normal(key, (n, c, h, w), dtype=jnp.float32)

    out = jax.block_until_ready(gradient_x(x, reverse=False, pad=True))
    ref = _reference(x, reverse=False, pad=True)
    assert out.shape == (n, c, h, w + 1), out.shape
    assert jnp.allclose(out, ref, atol=1e-6), float(jnp.max(jnp.abs(out - ref)))

    # Reverse / no-pad variants for semantic coverage.
    out_r = jax.block_until_ready(gradient_x(x, reverse=True, pad=True))
    assert jnp.allclose(out_r, _reference(x, reverse=True, pad=True), atol=1e-6)

    out_np = jax.block_until_ready(gradient_x(x, reverse=False, pad=False))
    assert out_np.shape == (n, c, h, w - 1)
    assert jnp.allclose(out_np, _reference(x, reverse=False, pad=False), atol=1e-6)

    # Row count not a multiple of the tile: exercises the cdiv / partial
    # trailing-block path.
    key2 = jax.random.PRNGKey(0)
    x_odd = jax.random.normal(key2, (1, 3, 7, 20), dtype=jnp.float32)  # rows=21
    out_odd = jax.block_until_ready(gradient_x(x_odd, reverse=False, pad=True))
    ref_odd = _reference(x_odd, reverse=False, pad=True)
    assert out_odd.shape == (1, 3, 7, 21), out_odd.shape
    assert jnp.allclose(out_odd, ref_odd, atol=1e-6)

    # bf16 path exercises the dtype-aware (16-row) sublane rounding.
    x_bf = jax.random.normal(key, (2, 4, 32, 128), dtype=jnp.bfloat16)
    out_bf = jax.block_until_ready(gradient_x(x_bf, reverse=False, pad=True))
    ref_bf = _reference(x_bf, reverse=False, pad=True)
    assert out_bf.shape == (2, 4, 32, 129), out_bf.shape
    assert jnp.allclose(out_bf.astype(jnp.float32), ref_bf.astype(jnp.float32),
                        atol=1e-2)

    print("KERNEL_OK")
</pallas_src>

<mosaic_0001>
module attributes {stable_mosaic.version = 11 : i64} {
  func.func @_gradx_kernel(%arg0: i32, %arg1: memref<32x16xf32, #tpu.memory_space<vmem>>, %arg2: memref<32x17xf32, #tpu.memory_space<vmem>>) attributes {dimension_semantics = [#tpu.dimension_semantics<parallel>], iteration_bounds = array<i64: 4>, scalar_prefetch = 0 : i64, scratch_operands = 0 : i64, tpu.core_type = #tpu.core_type<tc>, window_params = [{transform_indices = @transform_0, window_bounds = array<i64: 32, 16>}, {transform_indices = @transform_1, window_bounds = array<i64: 32, 17>}]} {
    %c0 = arith.constant 0 : index
    %c0_0 = arith.constant 0 : index
    %0 = vector.load %arg1[%c0, %c0_0] : memref<32x16xf32, #tpu.memory_space<vmem>>, vector<32x16xf32>
    %1 = vector.extract_strided_slice %0 {offsets = [0, 15], sizes = [32, 1], strides = [1, 1]} : vector<32x16xf32> to vector<32x1xf32>
    %2 = tpu.concatenate %0, %1 in 1 : vector<32x16xf32>, vector<32x1xf32> -> vector<32x17xf32>
    %3 = vector.extract_strided_slice %0 {offsets = [0, 0], sizes = [32, 1], strides = [1, 1]} : vector<32x16xf32> to vector<32x1xf32>
    %4 = tpu.concatenate %3, %0 in 1 : vector<32x1xf32>, vector<32x16xf32> -> vector<32x17xf32>
    %5 = arith.subf %2, %4 : vector<32x17xf32>
    %c0_1 = arith.constant 0 : index
    %c0_2 = arith.constant 0 : index
    %6 = vector.load %arg2[%c0_1, %c0_2] : memref<32x17xf32, #tpu.memory_space<vmem>>, vector<32x17xf32>
    tpu.vector_store %arg2[%c0_1, %c0_2], %5 {strides = array<i32>} : memref<32x17xf32, #tpu.memory_space<vmem>>, vector<32x17xf32>,
    return
  }
  func.func @transform_0(%arg0: i32) -> (i32, i32) {
    %c0_i32 = arith.constant 0 : i32
    %c0_i32_0 = arith.constant 0 : i32
    return %arg0, %c0_i32 : i32, i32
  }
  func.func @transform_1(%arg0: i32) -> (i32, i32) {
    %c0_i32 = arith.constant 0 : i32
    %c0_i32_0 = arith.constant 0 : i32
    return %arg0, %c0_i32 : i32, i32
  }
}

</mosaic_0001>

<bundles_post_ra>
// kernel: gradient_x.1
= control target key start
LH: loop header
LB: loop body
LE: loop exit
PB: predicated region body
PF: predicated region fallthrough
CT: control target
= control target key end

     0   :  { %6 = vsyncpa [#allocation3], 0  ;;  %s587_s0 = inlined_call_operand.hbm [shape: f32[128,16], index: 0, kind: input, shape index: {}]   ;;  %s588_s1 = inlined_call_operand.hbm [shape: f32[128,17], index: 1, kind: output, shape index: {}]  }
   0x1   :  { %8 = vsyncpa [#allocation3 + $0x1], 0 }
   0x2   :  { %9 = vsyncpa [#allocation4], 0 }
   0x3   :  { %11 = vsyncpa [#allocation4 + $0x1], 0  ;;  %s447_s6 = smov 0   ;;  %s449_s7 = smov 0  }
   0x4   :  { %s451_s8 = smov 0   ;;  %s453_s9 = smov 0  }
   0x5 LB: > { %s468_s10 = sadd.s32 4294967295, %s430_s9   ;;  %s267_s11 = sadd.s32 4294967294, %s430_s9   ;;  %s430_s9 = sphi %s453_s9, %s597_s9   ;;  %s426_s8 = sphi %s451_s8, %s596_s8   ;;  %s422_s7 = sphi %s449_s7, %s595_s7   ;;  %s418_s6 = sphi %s447_s6, %s594_s6  }
   0x6   : > { %s472_s12 = sadd.s32 1, %s430_s9   ;;  %s24_s13 = sadd.s32 1, %s426_s8 }
   0x7   : > { %s21_s14 = ssub.s32 %s430_s9, %s472_s12  ;;  %p31_p0 = scmp.ne.s32.totalorder %s426_s8, %s422_s7 }
   0x8   : > { %p22_p1 = scmp.eq.s32.totalorder %s21_s14, 0  ;;  %p32_p2 = scmp.eq.s32.totalorder %s430_s9, 0 }
   0x9   : > { %p37_p3 = scmp.ne.s32.totalorder %s422_s7, %s418_s6  ;;  %p38_p4 = scmp.eq.s32.totalorder %s468_s10, 0 }
   0xa   : > { %s484_s15 = scalar_select %p22_p1, %s426_s8, %s24_s13  }
   0xb   : > { %p486_p5 = por %p32_p2, %p31_p0  ;;  %p490_p6 = por %p38_p4, %p37_p3 }
   0xc   : > { %p61_p7 = scmp.eq.s32.totalorder %s468_s10, 3  ;;  %p67_p8 = scmp.eq.s32.totalorder %s267_s11, 3 }
   0xd   : > { %p295_p9 = scmp.lt.s32.totalorder %s430_s9, 4  ;;  %s87_s20 = sand.u32 1, %s426_s8  }
   0xe   : > { %p496_p10 = por %p61_p7, %p31_p0  ;;  %p500_p11 = por %p67_p8, %p37_p3 }
   0xf   : > { %s281_s21 = sshll.u32 %s430_s9, 5  ;;  %s270_s22 = sshll.u32 %s87_s20, 5 }
  0x10   : > { %s96_s25 = scalar_lea.hbm %s587_s0, %s281_s21  ;;  %s91_s27 = scalar_lea.vmem [#allocation2], %s270_s22 }
  0x11   : > { %s97_s26 = sshll.u32 %s96_s25, 4  ;;  %s99_s28 = sshll.u32 %s91_s27, 4  ;;  %s98_s26 = int_to_ptr.hbm [resolvable:$true] %s97_s26  ;;  %s100_s28 = int_to_ptr.vmem [resolvable:$true] %s99_s28 }
  0x12   : > { %p511_p12 = pnand %p295_p9, %p486_p5  ;;  %p273_p13 = scmp.ge.s32.totalorder %s430_s9, 1 }
  0x13   : > { %p107_p0 = scmp.lt.s32.totalorder %s430_s9, 5  ;;  %s88_s30 = scalar_lea.sflag [#allocation3], %s87_s20 }
  0x14   : > { %s334_s2 = sshra.s32 %s98_s26, 4  ;;  %p338_p2 = pneg %p511_p12  ;;  %s335_s2 = int_to_ptr.hbm [resolvable:$true] %s334_s2 }
  0x15   : > { %s336_s3 = scalar_lea.hbm %s335_s2, 32  ;;  %s341_s11 = scalar_lea.hbm %s587_s0, 128 }
  0x16   : > { %p337_p1 = scmp.ne.s32.totalorder %s335_s2, %s336_s3  ;;  %p342_p5 = scmp.lt.s32.totalorder %s335_s2, %s587_s0 }
  0x17   : > { %p343_p7 = scmp.lt.s32.totalorder %s341_s11, %s336_s3 }
  0x18   : > { %p339_p3 = pnand %p338_p2, %p337_p1 }
  0x19   : > { %p344_p8 = por %p343_p7, %p342_p5 }
  0x1a   : > { %p340_p4 = pneg %p339_p3 }
  0x1c   : > { %p345_p9 = pnand %p344_p8, %p340_p4 }
  0x1e   : > { %348 = shalt.err (!%p345_p9)
}
  0x1f   : > { %s432_s16 = smov 128   ;;  %s433_s20 = smov 8  }
  0x20   : > { %290 = dma.hbm_to_vmem [thread:$0]  (!%p511_p12), %s98_s26, 512, %s100_s28, %s88_s30, %s432_s16, %s432_s16, %s433_s20  }
  0x21   : > { %p108_p1 = pnand %p273_p13, %p107_p0 }
  0x22   : > { %s532_s21 = sand.u32 (!%p108_p1), 1, %s422_s7  }
  0x23   : > { %111 = sbr.rel (%p108_p1) target bundleno = 173 (0xad), region = 24  ;;  %s274_s22 = sshll.u32 (!%p108_p1), %s532_s21, 5 }
  0x24   : > { %s114_s23 = scalar_lea.sflag (!%p108_p1), [#allocation3], %s532_s21  ;;  %s117_s24 = scalar_lea.vmem (!%p108_p1), [#allocation2], %s274_s22 }
  0x28   : > { %409 = dma.done.wait (%p490_p6), %s114_s23, 512  }
  0x29   : > { %411 = vsyncadd (%p490_p6), %s114_s23, 4294966784  ;;  %v141_v0 = vld [vmem:[%s117_s24 + $0x10] sm:$0xff]  ;;  %v139_v1 = vld [vmem:[%s117_s24] sm:$0xff]  ;;  %s434_s25 = smov 1   ;;  %vm159_vm0 = vcmask 130048   ;;  %vm164_vm1 = vcmask 7168  }
  0x2a   : > { %151 = vrot.lane.b32.xlu1 %v141_v0, %s434_s25  ;;  %147 = vrot.lane.b32.xlu0 %v139_v1, %s434_s25  ;;  %v142_v2 = vld [vmem:[%s117_s24 + $0x18] sm:$0xff]  ;;  %v140_v3 = vld [vmem:[%s117_s24 + $0x8] sm:$0xff]  ;;  %vm173_vm2 = vcmask 138240   ;;  %s282_s17 = sshll.u32 %s468_s10, 5  ;;  %s136_s26 = scalar_lea.vmem [#allocation5], %s274_s22 }
  0x2b   : > { %s190_s29 = scalar_lea.hbm %s588_s1, %s282_s17  ;;  %s191_s30 = sshll.u32 %s136_s26, 4  ;;  %s550_s30 = int_to_ptr.vmem [resolvable:$true] %s191_s30 }
  0x2c   : > { %s193_s2 = sshll.u32 %s190_s29, 4  ;;  %s179_s10 = scalar_lea.sflag [#allocation4], %s532_s21  ;;  %s194_s2 = int_to_ptr.hbm [resolvable:$true] %s193_s2 }
  0x2d   : > { %s378_s3 = sshra.s32 %s194_s2, 4  ;;  %s384_s13 = scalar_lea.hbm %s588_s1, 128  ;;  %s379_s3 = int_to_ptr.hbm [resolvable:$true] %s378_s3 }
  0x2e   : > { %s380_s4 = scalar_lea.hbm %s379_s3, 32  ;;  %p385_p0 = scmp.lt.s32.totalorder %s379_s3, %s588_s1 }
  0x2f   : > { %p381_p6 = scmp.ne.s32.totalorder %s379_s3, %s380_s4  ;;  %p386_p2 = scmp.lt.s32.totalorder %s384_s13, %s380_s4 }
  0x31   : > { %p382_p12 = pnand %p381_p6, %p496_p10  ;;  %p387_p3 = por %p386_p2, %p385_p0 }
  0x32   : > { %153 = vrot.lane.b32.xlu1 %v142_v2, %s434_s25  ;;  %149 = vrot.lane.b32.xlu0 %v140_v3, %s434_s25 }
  0x33   : > { %p383_p13 = pneg %p382_p12 }
  0x35   : > { %p388_p4 = pnand %p387_p3, %p383_p13 }
  0x9c   : > { %v152_v4 = vpop.permute.xlu1 %151  ;;  %v148_v5 = vpop.permute.xlu0 %147 }
  0x9d   : > { %v162_v6 = vsel %vm159_vm0, %v141_v0, %v152_v4  ;;  %v167_v7 = vsel %vm164_vm1, %v141_v0, %v152_v4  ;;  %v160_v8 = vsel %vm159_vm0, %v139_v1, %v148_v5  ;;  %v165_v9 = vsel %vm164_vm1, %v139_v1, %v148_v5 }
  0x9e   : > { %v171_v10 = vsub.f32 %v162_v6, %v167_v7  ;;  %v169_v11 = vsub.f32 %v160_v8, %v165_v9 }
  0xa0   : > { %176 = vst.msk [vmem:[%s136_s26 + $0x10] sm:$0xff] %vm173_vm2, %v171_v10 }
  0xa1   : > { %174 = vst.msk [vmem:[%s136_s26] sm:$0xff] %vm173_vm2, %v169_v11 }
  0xa4   : > { %v154_v12 = vpop.permute.xlu1 %153  ;;  %v150_v13 = vpop.permute.xlu0 %149 }
  0xa5   : > { %v163_v14 = vsel %vm159_vm0, %v142_v2, %v154_v12  ;;  %v168_v15 = vsel %vm164_vm1, %v142_v2, %v154_v12  ;;  %v161_v16 = vsel %vm159_vm0, %v140_v3, %v150_v13  ;;  %v166_v17 = vsel %vm164_vm1, %v140_v3, %v150_v13 }
  0xa6   : > { %v172_v18 = vsub.f32 %v163_v14, %v168_v15  ;;  %v170_v19 = vsub.f32 %v161_v16, %v166_v17 }
  0xa8   : > { %177 = vst.msk [vmem:[%s136_s26 + $0x18] sm:$0xff] %vm173_vm2, %v172_v18 }
  0xa9   : > { %175 = vst.msk [vmem:[%s136_s26 + $0x8] sm:$0xff] %vm173_vm2, %v170_v19 }
  0xaa   : > { %391 = shalt.err (!%p388_p4)
}
  0xab   : > { %s435_s20 = smov 128   ;;  %s436_s21 = smov 8  }
  0xac   : > { %285 = dma.vmem_to_hbm [thread:$0]  (%p496_p10), %s550_s30, 512, %s194_s2, %s179_s10, %s435_s20, %s435_s20, %s436_s21  }
  0xad PF: > { %p296_p5 = scmp.ge.s32.totalorder %s430_s9, 2  ;;  %s208_s22 = sand.u32 1, %s418_s6  }
  0xae   : > { %s209_s23 = scalar_lea.sflag [#allocation4], %s208_s22 }
  0xaf   : > { %p292_p7 = pnand %p296_p5, %p500_p11 }
  0xb1   : > { %p293_p8 = pneg %p292_p7 }
  0xb3   : > { %413 = dma.done.wait (%p293_p8), %s209_s23, 512  }
  0xb4   : > { %415 = vsyncadd (%p293_p8), %s209_s23, 4294966784  ;;  %p14_p9 = scmp.ge.s32.totalorder %s472_s12, 6   ;;  %s594_s6 = smov %s422_s7 }
  0xb5   : > { %s595_s7 = smov %s426_s8  ;;  %s596_s8 = smov %s484_s15 }
  0xb6   : > { %s597_s9 = smov %s472_s12  ;;  %16 = sbr.rel (!%p14_p9) target bundleno = 5 (0x5), region = 69 }
  0xbb   :  { %215 = vsyncpa [#allocation3], 1 }
  0xbc   :  { %217 = vsyncpa [#allocation3 + $0x1], 1 }
  0xbd   :  { %218 = vsyncpa [#allocation4], 1 }
  0xbe   :  { %220 = vsyncpa [#allocation4 + $0x1], 1 }

</bundles_post_ra>
